<compile_context>
chip_gen: v7x
topology: tpu7x:2x2x1
jax: 0.10.0
libtpu: 0.0.40
codegen_flags: <defaults>
</compile_context>

<pallas_src>
import functools

import jax
import jax.numpy as jnp
from jax.experimental import pallas as pl
from jax.experimental.pallas import tpu as pltpu

LANE = 128        # lane width / padded hidden+output width
SUB = 8           # sublane multiple for f32 batch tiles
SPLIT_MIN = 256   # min rows before splitting into >=2 grid steps (megacore)


def _round_up(x, m):
    return ((x + m - 1) // m) * m


def _pad2(a, shape):
    """Zero-pad a 2-D array up to `shape`."""
    return jnp.pad(a, [(0, s - d) for s, d in zip(shape, a.shape)])


def dqn_kernel(x_ref, w1_ref, w2_ref, w3_ref, b_ref, o_ref):
    # x stays f32 in HBM/VMEM (single HBM pass); cast to bf16 on the VPU just
    # before the MXU. All matmuls accumulate in f32; epilogues stay in f32.
    x = x_ref[...].astype(jnp.bfloat16)
    b = b_ref[...]                                        # (3, 128) f32 biases
    # fc1 + relu
    h1 = jnp.dot(x, w1_ref[...], preferred_element_type=jnp.float32)
    h1 = jnp.maximum(h1 + b[0:1, :], 0.0)
    # fc2 + relu
    h2 = jnp.dot(h1.astype(jnp.bfloat16), w2_ref[...],
                 preferred_element_type=jnp.float32)
    h2 = jnp.maximum(h2 + b[1:2, :], 0.0)
    # out (no activation)
    o = jnp.dot(h2.astype(jnp.bfloat16), w3_ref[...],
                preferred_element_type=jnp.float32)
    o_ref[...] = (o + b[2:3, :]).astype(o_ref.dtype)


def prep_params(params):
    """One-time pad+cast of weights/biases (hoisted out of the per-call path).

    Zero padding is semantics-preserving: zero columns -> relu(0)=0 -> zero
    rows of the next weight contribute 0.
    """
    in_f = params["w1"].shape[0]
    f_pad = _round_up(in_f, LANE)
    w1 = _pad2(params["w1"], (f_pad, LANE)).astype(jnp.bfloat16)
    w2 = _pad2(params["w2"], (LANE, LANE)).astype(jnp.bfloat16)
    w3 = _pad2(params["w3"], (LANE, LANE)).astype(jnp.bfloat16)
    biases = jnp.concatenate(
        [_pad2(params[f"b{i}"], (1, LANE)) for i in (1, 2, 3)], axis=0)  # (3,128) f32
    return {"w1": w1, "w2": w2, "w3": w3, "b": biases}


@functools.partial(jax.jit, static_argnames=("n_out", "max_batch_tile"))
def dqn_forward(t_nchw, prepped, *, n_out=12, max_batch_tile=2048):
    """t_nchw: (B, 3, H, W) float32. prepped: output of prep_params."""
    B = t_nchw.shape[0]
    # Same flatten semantics as torch flatten(start_dim=1).
    x = t_nchw.reshape(B, -1).astype(jnp.float32)
    f_pad = prepped["w1"].shape[0]

    # Batch tiling: pad B to a sublane multiple; small batches -> single step.
    b8 = _round_up(B, SUB)
    tb = min(max_batch_tile, b8)
    # Megacore: never collapse a mid/large batch into a single grid step,
    # otherwise the "parallel" axis can't be sharded across TensorCores.
    if tb == b8 and b8 >= 2 * SPLIT_MIN:
        tb = _round_up((b8 + 1) // 2, SUB)
    b_pad = _round_up(b8, tb)
    n_blocks = b_pad // tb

    # Activations stay f32; zero padding of batch/feature dims is exact.
    xp = _pad2(x, (b_pad, f_pad))

    out = pl.pallas_call(
        dqn_kernel,
        out_shape=jax.ShapeDtypeStruct((b_pad, LANE), jnp.float32),
        grid=(n_blocks,),
        in_specs=[
            pl.BlockSpec((tb, f_pad), lambda i: (i, 0)),     # x: tiled on batch
            pl.BlockSpec((f_pad, LANE), lambda i: (0, 0)),   # w1: VMEM-resident
            pl.BlockSpec((LANE, LANE), lambda i: (0, 0)),    # w2
            pl.BlockSpec((LANE, LANE), lambda i: (0, 0)),    # w3
            pl.BlockSpec((3, LANE), lambda i: (0, 0)),       # stacked biases
        ],
        out_specs=pl.BlockSpec((tb, LANE), lambda i: (i, 0)),
        compiler_params=pltpu.CompilerParams(
            dimension_semantics=("parallel",),
            vmem_limit_bytes=48 * 1024 * 1024),
    )(xp, prepped["w1"], prepped["w2"], prepped["w3"], prepped["b"])

    # Slice inside the same jit so it fuses with the kernel's writeback.
    return out[:B, :n_out]


def init_params(key, img_height, img_width):
    """Deterministic init mimicking torch.nn.Linear (U[-1/sqrt(fan_in), +])."""
    in_f = img_height * img_width * 3
    dims = [(in_f, 24), (24, 32), (32, 12)]
    params = {}
    for i, (fan_in, fan_out) in enumerate(dims, start=1):
        key, kw, kb = jax.random.split(key, 3)
        bound = 1.0 / float(fan_in) ** 0.5
        # stored as (in, out) so the kernel can do x @ W
        params[f"w{i}"] = jax.random.uniform(
            kw, (fan_in, fan_out), jnp.float32, -bound, bound)
        params[f"b{i}"] = jax.random.uniform(
            kb, (1, fan_out), jnp.float32, -bound, bound)
    return params


def reference_forward_f32(t_nchw, params):
    x = t_nchw.reshape(t_nchw.shape[0], -1)
    h1 = jnp.maximum(x @ params["w1"] + params["b1"], 0.0)
    h2 = jnp.maximum(h1 @ params["w2"] + params["b2"], 0.0)
    return h2 @ params["w3"] + params["b3"]


def reference_forward_bf16(t_nchw, params):
    """Mirror of the kernel's precision path (bf16 MXU inputs, f32 acc)."""
    x = t_nchw.reshape(t_nchw.shape[0], -1).astype(jnp.bfloat16)
    h1 = jnp.dot(x, params["w1"].astype(jnp.bfloat16),
                 preferred_element_type=jnp.float32)
    h1 = jnp.maximum(h1 + params["b1"], 0.0)
    h2 = jnp.dot(h1.astype(jnp.bfloat16), params["w2"].astype(jnp.bfloat16),
                 preferred_element_type=jnp.float32)
    h2 = jnp.maximum(h2 + params["b2"], 0.0)
    o = jnp.dot(h2.astype(jnp.bfloat16), params["w3"].astype(jnp.bfloat16),
                preferred_element_type=jnp.float32)
    return o + params["b3"]


if __name__ == "__main__":
    img_height, img_width = 16, 16
    batch = 2

    key = jax.random.PRNGKey(0)
    key, kx = jax.random.split(key)
    t = jax.random.normal(kx, (batch, 3, img_height, img_width), jnp.float32)
    params = init_params(jax.random.PRNGKey(0), img_height, img_width)
    prepped = jax.tree_util.tree_map(jax.block_until_ready, prep_params(params))
    n_out = params["w3"].shape[1]

    # Small-batch path (single grid step).
    out = jax.block_until_ready(dqn_forward(t, prepped, n_out=n_out))
    assert out.shape == (batch, 12), out.shape
    ref32 = reference_forward_f32(t, params)
    ref16 = reference_forward_bf16(t, params)
    assert jnp.allclose(out, ref16, atol=5e-3, rtol=5e-3), "mismatch vs bf16 ref"
    assert jnp.allclose(out, ref32, atol=2e-2, rtol=2e-2), "mismatch vs f32 ref"

    # Multi-tile path (grid > 1 with a partial last batch tile).
    key, kx2 = jax.random.split(key)
    t_big = jax.random.normal(kx2, (20, 3, img_height, img_width), jnp.float32)
    out_big = jax.block_until_ready(
        dqn_forward(t_big, prepped, n_out=n_out, max_batch_tile=8))
    assert out_big.shape == (20, 12), out_big.shape
    ref_big16 = reference_forward_bf16(t_big, params)
    assert jnp.allclose(out_big, ref_big16, atol=5e-3, rtol=5e-3), "mismatch (grid>1)"

    # Mid-size batch: exercises the >=2-grid-step (megacore) split heuristic.
    key, kx3 = jax.random.split(key)
    t_mid = jax.random.normal(kx3, (512, 3, img_height, img_width), jnp.float32)
    out_mid = jax.block_until_ready(dqn_forward(t_mid, prepped, n_out=n_out))
    assert out_mid.shape == (512, 12), out_mid.shape
    ref_mid16 = reference_forward_bf16(t_mid, params)
    assert jnp.allclose(out_mid, ref_mid16, atol=5e-3, rtol=5e-3), "mismatch (split)"

    print("KERNEL_OK")
</pallas_src>

<mosaic_0001>
module attributes {stable_mosaic.version = 11 : i64} {
  func.func @dqn_kernel(%arg0: i32, %arg1: memref<8x768xf32, #tpu.memory_space<vmem>>, %arg2: memref<768x128xbf16, #tpu.memory_space<vmem>>, %arg3: memref<128x128xbf16, #tpu.memory_space<vmem>>, %arg4: memref<128x128xbf16, #tpu.memory_space<vmem>>, %arg5: memref<3x128xf32, #tpu.memory_space<vmem>>, %arg6: memref<8x128xf32, #tpu.memory_space<vmem>>) attributes {dimension_semantics = [#tpu.dimension_semantics<parallel>], iteration_bounds = array<i64: 1>, scalar_prefetch = 0 : i64, scratch_operands = 0 : i64, tpu.core_type = #tpu.core_type<tc>, window_params = [{transform_indices = @transform_0, window_bounds = array<i64: 8, 768>}, {pipeline_mode = #tpu.pipeline_mode<synchronous>, transform_indices = @transform_1, window_bounds = array<i64: 768, 128>}, {pipeline_mode = #tpu.pipeline_mode<synchronous>, transform_indices = @transform_2, window_bounds = array<i64: 128, 128>}, {pipeline_mode = #tpu.pipeline_mode<synchronous>, transform_indices = @transform_3, window_bounds = array<i64: 128, 128>}, {pipeline_mode = #tpu.pipeline_mode<synchronous>, transform_indices = @transform_4, window_bounds = array<i64: 3, 128>}, {transform_indices = @transform_5, window_bounds = array<i64: 8, 128>}]} {
    %c0 = arith.constant 0 : index
    %c0_0 = arith.constant 0 : index
    %0 = vector.load %arg1[%c0, %c0_0] : memref<8x768xf32, #tpu.memory_space<vmem>>, vector<8x768xf32>
    %1 = arith.truncf %0 : vector<8x768xf32> to vector<8x768xbf16>
    %c0_1 = arith.constant 0 : index
    %c0_2 = arith.constant 0 : index
    %2 = vector.load %arg5[%c0_1, %c0_2] : memref<3x128xf32, #tpu.memory_space<vmem>>, vector<3x128xf32>
    %c0_3 = arith.constant 0 : index
    %c0_4 = arith.constant 0 : index
    %3 = vector.load %arg2[%c0_3, %c0_4] : memref<768x128xbf16, #tpu.memory_space<vmem>>, vector<768x128xbf16>
    %cst = arith.constant dense<0.000000e+00> : vector<8x128xf32>
    %4 = tpu.matmul %1, %3, %cst {dimension_numbers = #tpu.dot_dimension_numbers<[1], [0], [0], [1], [0, 0, 1, 1], [], []>} : vector<8x768xbf16>, vector<768x128xbf16>, vector<8x128xf32> -> vector<8x128xf32>
    %5 = vector.extract_strided_slice %2 {offsets = [0, 0], sizes = [1, 128], strides = [1, 1]} : vector<3x128xf32> to vector<1x128xf32>
    %6 = vector.broadcast %5 : vector<1x128xf32> to vector<8x128xf32>
    %7 = arith.addf %4, %6 : vector<8x128xf32>
    %cst_5 = arith.constant 0.000000e+00 : f32
    %8 = vector.broadcast %cst_5 : f32 to vector<8x128xf32>
    %9 = arith.maximumf %7, %8 : vector<8x128xf32>
    %10 = arith.truncf %9 : vector<8x128xf32> to vector<8x128xbf16>
    %c0_6 = arith.constant 0 : index
    %c0_7 = arith.constant 0 : index
    %11 = vector.load %arg3[%c0_6, %c0_7] : memref<128x128xbf16, #tpu.memory_space<vmem>>, vector<128x128xbf16>
    %cst_8 = arith.constant dense<0.000000e+00> : vector<8x128xf32>
    %12 = tpu.matmul %10, %11, %cst_8 {dimension_numbers = #tpu.dot_dimension_numbers<[1], [0], [0], [1], [0, 0, 1, 1], [], []>} : vector<8x128xbf16>, vector<128x128xbf16>, vector<8x128xf32> -> vector<8x128xf32>
    %13 = vector.extract_strided_slice %2 {offsets = [1, 0], sizes = [1, 128], strides = [1, 1]} : vector<3x128xf32> to vector<1x128xf32>
    %14 = vector.broadcast %13 : vector<1x128xf32> to vector<8x128xf32>
    %15 = arith.addf %12, %14 : vector<8x128xf32>
    %cst_9 = arith.constant 0.000000e+00 : f32
    %16 = vector.broadcast %cst_9 : f32 to vector<8x128xf32>
    %17 = arith.maximumf %15, %16 : vector<8x128xf32>
    %18 = arith.truncf %17 : vector<8x128xf32> to vector<8x128xbf16>
    %c0_10 = arith.constant 0 : index
    %c0_11 = arith.constant 0 : index
    %19 = vector.load %arg4[%c0_10, %c0_11] : memref<128x128xbf16, #tpu.memory_space<vmem>>, vector<128x128xbf16>
    %cst_12 = arith.constant dense<0.000000e+00> : vector<8x128xf32>
    %20 = tpu.matmul %18, %19, %cst_12 {dimension_numbers = #tpu.dot_dimension_numbers<[1], [0], [0], [1], [0, 0, 1, 1], [], []>} : vector<8x128xbf16>, vector<128x128xbf16>, vector<8x128xf32> -> vector<8x128xf32>
    %21 = vector.extract_strided_slice %2 {offsets = [2, 0], sizes = [1, 128], strides = [1, 1]} : vector<3x128xf32> to vector<1x128xf32>
    %22 = vector.broadcast %21 : vector<1x128xf32> to vector<8x128xf32>
    %23 = arith.addf %20, %22 : vector<8x128xf32>
    %c0_13 = arith.constant 0 : index
    %c0_14 = arith.constant 0 : index
    %24 = vector.load %arg6[%c0_13, %c0_14] : memref<8x128xf32, #tpu.memory_space<vmem>>, vector<8x128xf32>
    tpu.vector_store %arg6[%c0_13, %c0_14], %23 {strides = array<i32>} : memref<8x128xf32, #tpu.memory_space<vmem>>, vector<8x128xf32>,
    return
  }
  func.func @transform_0(%arg0: i32) -> (i32, i32) {
    %c0_i32 = arith.constant 0 : i32
    %c0_i32_0 = arith.constant 0 : i32
    return %arg0, %c0_i32 : i32, i32
  }
  func.func @transform_1(%arg0: i32) -> (i32, i32) {
    %c0_i32 = arith.constant 0 : i32
    %c0_i32_0 = arith.constant 0 : i32
    %c0_i32_1 = arith.constant 0 : i32
    return %c0_i32, %c0_i32_0 : i32, i32
  }
  func.func @transform_2(%arg0: i32) -> (i32, i32) {
    %c0_i32 = arith.constant 0 : i32
    %c0_i32_0 = arith.constant 0 : i32
    %c0_i32_1 = arith.constant 0 : i32
    return %c0_i32, %c0_i32_0 : i32, i32
  }
  func.func @transform_3(%arg0: i32) -> (i32, i32) {
    %c0_i32 = arith.constant 0 : i32
    %c0_i32_0 = arith.constant 0 : i32
    %c0_i32_1 = arith.constant 0 : i32
    return %c0_i32, %c0_i32_0 : i32, i32
  }
  func.func @transform_4(%arg0: i32) -> (i32, i32) {
    %c0_i32 = arith.constant 0 : i32
    %c0_i32_0 = arith.constant 0 : i32
    %c0_i32_1 = arith.constant 0 : i32
    return %c0_i32, %c0_i32_0 : i32, i32
  }
  func.func @transform_5(%arg0: i32) -> (i32, i32) {
    %c0_i32 = arith.constant 0 : i32
    %c0_i32_0 = arith.constant 0 : i32
    return %arg0, %c0_i32 : i32, i32
  }
}

</mosaic_0001>

<bundles_post_ra>
// kernel: dqn_forward.1
= control target key start
LH: loop header
LB: loop body
LE: loop exit
PB: predicated region body
PF: predicated region fallthrough
CT: control target
= control target key end

     0   :  { %10 = vsyncpa [#allocation3], 0  ;;  %s1063_s18 = smov [#allocation2]   ;;  %s1200_s0 = inlined_call_operand.vmem [shape: f32[8,768], index: 0, kind: input, shape index: {}]   ;;  %s1201_s1 = inlined_call_operand.hbm [shape: bf16[768,128], index: 1, kind: input, shape index: {}]   ;;  %s1202_s2 = inlined_call_operand.vmem [shape: bf16[128,128], index: 2, kind: input, shape index: {}]   ;;  %s1203_s3 = inlined_call_operand.vmem [shape: bf16[128,128], index: 3, kind: input, shape index: {}]   ;;  %s1204_s4 = inlined_call_operand.vmem [shape: f32[3,128], index: 4, kind: input, shape index: {}]   ;;  %s1205_s5 = inlined_call_operand.vmem [shape: f32[8,128], index: 5, kind: output, shape index: {}]  }
   0x1   :  { %s18_s19 = sshll.u32 %s1063_s18, 4  ;;  %s1039_s22 = scalar_lea.hbm %s1201_s1, 6144  ;;  %s19_s19 = int_to_ptr.vmem [resolvable:$true] %s18_s19 }
   0x2   :  { %p1040_p0 = scmp.ne.s32.totalorder %s1201_s1, %s1039_s22  ;;  %p1043_p1 = scmp.lt.u32.totalorder %s1039_s22, %s1201_s1 }
   0x4   :  { %p1045_p2 = pnand %p1043_p1, %p1040_p0 }
   0x6   :  { %1048 = shalt.err (!%p1045_p2)
}
   0x7   :  { %s1049_s27 = scalar_lea.vmem %s19_s19, 6144  ;;  %p1054_p4 = scmp.lt.s32.totalorder %s19_s19, %s19_s19 }
   0x8   :  { %p1050_p3 = scmp.ne.s32.totalorder %s19_s19, %s1049_s27  ;;  %p1055_p5 = scmp.lt.s32.totalorder %s1049_s27, %s1049_s27 }
   0xa   :  { %p1056_p6 = por %p1055_p5, %p1054_p4 }
   0xc   :  { %p1057_p7 = pnand %p1056_p6, %p1050_p3 }
   0xe   :  { %1060 = shalt.err (!%p1057_p7)
}
   0xf   :  { %s1064_s28 = smov 64   ;;  %s1065_s29 = smov 4  }
  0x10   :  { %24 = dma.hbm_to_vmem [thread:$0]  %s1201_s1, 6144, %s19_s19, [#allocation3], %s1064_s28, %s1064_s28, %s1065_s29  }
  0x11   :  { %1061 = dma.done.wait [#allocation3], 6144  }
  0x12   :  { %1062 = vsyncadd [#allocation3], 4294961152  ;;  %v975_v0 = vld [vmem:[#allocation2 + $0x40] sm:$0xff]   ;;  %v979_v4 = vld [vmem:[#allocation2 + $0x48] sm:$0xff]   ;;  %v1066_v61 = vmov 0.0   ;;  %vm1067_vm0 = vmmov 0  }
  0x13   :  { %v976_v1 = vld [vmem:[#allocation2] sm:$0xff]   ;;  %846 = vmatprep.subr.bf16.mxu0 %v975_v0  ;;  %v980_v5 = vld [vmem:[#allocation2 + $0x8] sm:$0xff]   ;;  %v983_v8 = vld [vmem:[#allocation2 + $0x50] sm:$0xff]  }
  0x14   :  { %v977_v2 = vld [vmem:[#allocation2 + $0xc0] sm:$0xff]   ;;  %847 = vmatpush3.bf16.msra.mxu0 %v976_v1  ;;  %v981_v6 = vld [vmem:[#allocation2 + $0xc8] sm:$0xff]   ;;  %v984_v9 = vld [vmem:[#allocation2 + $0x10] sm:$0xff]  }
  0x15   :  { %v978_v3 = vld [vmem:[#allocation2 + $0x80] sm:$0xff]   ;;  %868 = vmatprep.subr.bf16.mxu1 %v977_v2  ;;  %848 = vmatprep.subr.bf16.mxu0 %v979_v4  ;;  %v982_v7 = vld [vmem:[#allocation2 + $0x88] sm:$0xff]   ;;  %v985_v10 = vld [vmem:[#allocation2 + $0xd0] sm:$0xff]  }
  0x16   :  { %869 = vmatpush3.bf16.msra.mxu1 %v978_v3  ;;  %v986_v11 = vld [vmem:[#allocation2 + $0x90] sm:$0xff]   ;;  %v987_v12 = vld [vmem:[#allocation2 + $0x58] sm:$0xff]   ;;  %v991_v16 = vld [vmem:[#allocation2 + $0x60] sm:$0xff]  }
  0x17   :  { %870 = vmatprep.subr.bf16.mxu1 %v981_v6  ;;  %v988_v13 = vld [vmem:[#allocation2 + $0x18] sm:$0xff]   ;;  %v992_v17 = vld [vmem:[#allocation2 + $0x20] sm:$0xff]   ;;  %v995_v20 = vld [vmem:[#allocation2 + $0x68] sm:$0xff]  }
  0x18   :  { %849 = vmatpush3.bf16.msra.mxu0 %v980_v5  ;;  %v989_v14 = vld [vmem:[#allocation2 + $0xd8] sm:$0xff]   ;;  %v993_v18 = vld [vmem:[#allocation2 + $0xe0] sm:$0xff]   ;;  %v996_v21 = vld [vmem:[#allocation2 + $0x28] sm:$0xff]  }
  0x19   :  { %850 = vmatprep.subr.bf16.mxu0 %v983_v8  ;;  %v990_v15 = vld [vmem:[#allocation2 + $0x98] sm:$0xff]   ;;  %v994_v19 = vld [vmem:[#allocation2 + $0xa0] sm:$0xff]   ;;  %v997_v22 = vld [vmem:[#allocation2 + $0xe8] sm:$0xff]  }
  0x1a   :  { %871 = vmatpush3.bf16.msra.mxu1 %v982_v7  ;;  %v998_v23 = vld [vmem:[#allocation2 + $0xa8] sm:$0xff]   ;;  %v999_v24 = vld [vmem:[#allocation2 + $0x70] sm:$0xff]   ;;  %v1003_v28 = vld [vmem:[#allocation2 + $0x78] sm:$0xff]  }
  0x1b   :  { %872 = vmatprep.subr.bf16.mxu1 %v985_v10  ;;  %v1000_v25 = vld [vmem:[#allocation2 + $0x30] sm:$0xff]   ;;  %v1004_v29 = vld [vmem:[#allocation2 + $0x38] sm:$0xff]   ;;  %v36_v31 = vld [vmem:[%s1200_s0 + $0x8] sm:$0xff] }
  0x1c   :  { %851 = vmatpush3.bf16.msra.mxu0 %v984_v9  ;;  %v1001_v26 = vld [vmem:[#allocation2 + $0xf0] sm:$0xff]   ;;  %v1005_v30 = vld [vmem:[#allocation2 + $0xf8] sm:$0xff]   ;;  %v42_v32 = vpack.c.bf16 %v36_v31, %v36_v31  ;;  %v35_v34 = vld [vmem:[%s1200_s0] sm:$0xff] }
  0x1d   :  { %852 = vmatprep.subr.bf16.mxu0 %v987_v12  ;;  %v1002_v27 = vld [vmem:[#allocation2 + $0xb0] sm:$0xff]   ;;  %v1006_v33 = vld [vmem:[#allocation2 + $0xb8] sm:$0xff]   ;;  %v41_v35 = vpack.c.bf16 %v35_v34, %v35_v34  ;;  %v1007_v36 = vld [vmem:[#allocation2 + $0x140] sm:$0xff]  }
  0x1e   :  { %873 = vmatpush3.bf16.msra.mxu1 %v986_v11  ;;  %v38_v37 = vld [vmem:[%s1200_s0 + $0x18] sm:$0xff]  ;;  %468 = vmatprep.mubr.bf16.mxu0 %v42_v32  ;;  %v1008_v39 = vld [vmem:[#allocation2 + $0x100] sm:$0xff]   ;;  %v37_v40 = vld [vmem:[%s1200_s0 + $0x10] sm:$0xff]  ;;  %v144_v11 = vlaneseq }
  0x1f   :  { %874 = vmatprep.subr.bf16.mxu1 %v989_v14  ;;  %v44_v38 = vpack.c.bf16 %v38_v37, %v38_v37  ;;  %v43_v41 = vpack.c.bf16 %v37_v40, %v37_v40  ;;  %v1009_v42 = vld [vmem:[#allocation2 + $0x148] sm:$0xff]   ;;  %v1011_v44 = vld [vmem:[#allocation2 + $0x150] sm:$0xff]   ;;  %v1013_v46 = vld [vmem:[#allocation2 + $0x158] sm:$0xff]  }
  0x20   :  { %853 = vmatpush3.bf16.msra.mxu0 %v988_v13  ;;  %v1010_v43 = vld [vmem:[#allocation2 + $0x108] sm:$0xff]   ;;  %v1012_v45 = vld [vmem:[#allocation2 + $0x110] sm:$0xff]   ;;  %v1014_v47 = vld [vmem:[#allocation2 + $0x118] sm:$0xff]   ;;  %v145_v12 = vshrl.u32 %v144_v11, 7 }
  0x21   :  { %854 = vmatprep.subr.bf16.mxu0 %v991_v16  ;;  %508 = vmatprep.mubr.bf16.mxu1 %v44_v38  ;;  %v1015_v48 = vld [vmem:[#allocation2 + $0x160] sm:$0xff]   ;;  %v1017_v50 = vld [vmem:[#allocation2 + $0x168] sm:$0xff]   ;;  %v1019_v54 = vld [vmem:[#allocation2 + $0x170] sm:$0xff]  }
  0x22   :  { %875 = vmatpush3.bf16.msra.mxu1 %v990_v15  ;;  %v1016_v49 = vld [vmem:[#allocation2 + $0x120] sm:$0xff]   ;;  %v40_v51 = vld [vmem:[%s1200_s0 + $0x28] sm:$0xff]  ;;  %v1020_v55 = vld [vmem:[#allocation2 + $0x130] sm:$0xff]   ;;  %v146_v13 = vsub.s32 0, %v145_v12  ;;  %v576_v38 = vsub.s32 1, %v145_v12 }
  0x23   :  { %876 = vmatprep.subr.bf16.mxu1 %v993_v18  ;;  %v1018_v52 = vld [vmem:[#allocation2 + $0x128] sm:$0xff]   ;;  %v46_v53 = vpack.c.bf16 %v40_v51, %v40_v51  ;;  %v1021_v56 = vld [vmem:[#allocation2 + $0x178] sm:$0xff]   ;;  %v39_v58 = vld [vmem:[%s1200_s0 + $0x20] sm:$0xff] }
  0x24   :  { %855 = vmatpush3.bf16.msra.mxu0 %v992_v17  ;;  %v1022_v57 = vld [vmem:[#allocation2 + $0x138] sm:$0xff]   ;;  %v45_v59 = vpack.c.bf16 %v39_v58, %v39_v58  ;;  %v1023_v60 = vld [vmem:[%s1202_s2] sm:$0xff]   ;;  %v1024_v62 = vld [vmem:[%s1202_s2 + $0x8] sm:$0xff]  }
  0x25   :  { %856 = vmatprep.subr.bf16.mxu0 %v995_v20  ;;  %v1025_v63 = vld [vmem:[%s1202_s2 + $0x10] sm:$0xff]   ;;  %v1026_v0 = vld [vmem:[%s1202_s2 + $0x18] sm:$0xff]   ;;  %v1027_v1 = vld [vmem:[%s1202_s2 + $0x20] sm:$0xff]  }
  0x26   :  { %877 = vmatpush3.bf16.msra.mxu1 %v994_v19  ;;  %v1028_v2 = vld [vmem:[%s1202_s2 + $0x28] sm:$0xff]   ;;  %v1029_v3 = vld [vmem:[%s1202_s2 + $0x30] sm:$0xff]   ;;  %v1030_v4 = vld [vmem:[%s1202_s2 + $0x38] sm:$0xff]  }
  0x27   :  { %878 = vmatprep.subr.bf16.mxu1 %v997_v22  ;;  %v1031_v5 = vld [vmem:[%s1203_s3] sm:$0xff]   ;;  %v1032_v6 = vld [vmem:[%s1203_s3 + $0x8] sm:$0xff]   ;;  %v1033_v7 = vld [vmem:[%s1203_s3 + $0x10] sm:$0xff]  }
  0x28   :  { %857 = vmatpush3.bf16.msra.mxu0 %v996_v21  ;;  %v1034_v8 = vld [vmem:[%s1203_s3 + $0x18] sm:$0xff]   ;;  %v1035_v9 = vld [vmem:[%s1203_s3 + $0x20] sm:$0xff]   ;;  %v1036_v10 = vld [vmem:[%s1203_s3 + $0x28] sm:$0xff]  }
  0x29   :  { %858 = vmatprep.subr.bf16.mxu0 %v999_v24  ;;  %v47_v14 = vld [vmem:[%s1204_s4] sm:$0x7]  ;;  %v1038_v37 = vld [vmem:[%s1203_s3 + $0x38] sm:$0xff]  }
  0x2a   :  { %879 = vmatpush3.bf16.msra.mxu1 %v998_v23  ;;  %v147_v16 = vrot.slane %v47_v14, %v146_v13 }
  0x2b   :  { %880 = vmatprep.subr.bf16.mxu1 %v1001_v26 }
  0x2c   :  { %859 = vmatpush3.bf16.msra.mxu0 %v1000_v25 }
  0x2d   :  { %860 = vmatprep.subr.bf16.mxu0 %v1003_v28 }
  0x2e   :  { %881 = vmatpush3.bf16.msra.mxu1 %v1002_v27 }
  0x2f   :  { %882 = vmatprep.subr.bf16.mxu1 %v1005_v30 }
  0x30   :  { %861 = vmatpush3.bf16.msra.mxu0 %v1004_v29 }
  0x31   :  { %890 = vmatprep.subr.bf16.mxu0 %v1007_v36  ;;  %v1037_v36 = vld [vmem:[%s1203_s3 + $0x30] sm:$0xff]  }
  0x32   :  { %883 = vmatpush3.bf16.msra.mxu1 %v1006_v33 }
  0x33   :  { %469 = vmatmul.mubr.bf16.vlgmr.msra.gmra.mrb[0].mxu0 %v41_v35  ;;  %930 = vmatprep.subr.bf16.mxu1 %v1066_v61 }
  0x34   :  { %891 = vmatpush3.bf16.msra.mxu0 %v1008_v39  ;;  %548 = vmatprep.mubr.bf16.mxu0 %v46_v53  ;;  %v577_v39 = vrot.slane %v47_v14, %v576_v38 }
  0x35   :  { %509 = vmatmul.mubr.bf16.vlgmr.msra.gmra.mrb[0].mxu1 %v43_v41  ;;  %892 = vmatprep.subr.bf16.mxu0 %v1009_v42 }
  0x36   :  { %931 = vmatpush3.bf16.msra.mxu1 %v1023_v60  ;;  %946 = vmatprep.mubr.msk.bf16.mxu1 %vm1067_vm0, %v1066_v61 }
  0x37   :  { %932 = vmatprep.subr.bf16.mxu1 %v1066_v61 }
  0x38   :  { %893 = vmatpush3.bf16.msra.mxu0 %v1010_v43 }
  0x39   :  { %894 = vmatprep.subr.bf16.mxu0 %v1011_v44 }
  0x3a   :  { %933 = vmatpush3.bf16.msra.mxu1 %v1024_v62 }
  0x3b   :  { %934 = vmatprep.subr.bf16.mxu1 %v1066_v61 }
  0x3c   :  { %895 = vmatpush3.bf16.msra.mxu0 %v1012_v45 }
  0x3d   :  { %896 = vmatprep.subr.bf16.mxu0 %v1013_v46 }
  0x3e   :  { %935 = vmatpush3.bf16.msra.mxu1 %v1025_v63 }
  0x3f   :  { %936 = vmatprep.subr.bf16.mxu1 %v1066_v61 }
  0x40   :  { %897 = vmatpush3.bf16.msra.mxu0 %v1014_v47  ;;  %v686_v47 = vsub.s32 2, %v145_v12 }
  0x41   :  { %898 = vmatprep.subr.bf16.mxu0 %v1015_v48 }
  0x42   :  { %937 = vmatpush3.bf16.msra.mxu1 %v1026_v0  ;;  %v687_v48 = vrot.slane %v47_v14, %v686_v47 }
  0x43   :  { %938 = vmatprep.subr.bf16.mxu1 %v1066_v61 }
  0x44   :  { %899 = vmatpush3.bf16.msra.mxu0 %v1016_v49 }
  0x45   :  { %900 = vmatprep.subr.bf16.mxu0 %v1017_v50 }
  0x46   :  { %939 = vmatpush3.bf16.msra.mxu1 %v1027_v1 }
  0x47   :  { %940 = vmatprep.subr.bf16.mxu1 %v1066_v61 }
  0x48   :  { %901 = vmatpush3.bf16.msra.mxu0 %v1018_v52 }
  0x49   :  { %902 = vmatprep.subr.bf16.mxu0 %v1019_v54 }
  0x4a   :  { %941 = vmatpush3.bf16.msra.mxu1 %v1028_v2 }
  0x4b   :  { %942 = vmatprep.subr.bf16.mxu1 %v1066_v61 }
  0x4c   :  { %903 = vmatpush3.bf16.msra.mxu0 %v1020_v55 }
  0x4d   :  { %904 = vmatprep.subr.bf16.mxu0 %v1021_v56 }
  0x4e   :  { %943 = vmatpush3.bf16.msra.mxu1 %v1029_v3 }
  0x4f   :  { %944 = vmatprep.subr.bf16.mxu1 %v1066_v61 }
  0x50   :  { %905 = vmatpush3.bf16.msra.mxu0 %v1022_v57 }
  0x51   :  { %950 = vmatprep.subr.bf16.mxu0 %v1066_v61 }
  0x52   :  { %945 = vmatpush3.bf16.msra.mxu1 %v1030_v4 }
  0x53   :  { %549 = vmatmul.mubr.bf16.vlgmr.msra.gmra.mrb[4].mxu0 %v45_v59 }
  0x54   :  { %966 = vmatprep.mubr.msk.bf16.mxu0 %vm1067_vm0, %v1066_v61  ;;  %951 = vmatpush3.bf16.msra.mxu0 %v1031_v5 }
  0x55   :  { %952 = vmatprep.subr.bf16.mxu0 %v1066_v61 }
  0x58   :  { %953 = vmatpush3.bf16.msra.mxu0 %v1032_v6 }
  0x59   :  { %954 = vmatprep.subr.bf16.mxu0 %v1066_v61 }
  0x5c   :  { %955 = vmatpush3.bf16.msra.mxu0 %v1033_v7 }
  0x5d   :  { %956 = vmatprep.subr.bf16.mxu0 %v1066_v61 }
  0x60   :  { %957 = vmatpush3.bf16.msra.mxu0 %v1034_v8 }
  0x61   :  { %958 = vmatprep.subr.bf16.mxu0 %v1066_v61 }
  0x64   :  { %959 = vmatpush3.bf16.msra.mxu0 %v1035_v9 }
  0x65   :  { %960 = vmatprep.subr.bf16.mxu0 %v1066_v61 }
  0x68   :  { %961 = vmatpush3.bf16.msra.mxu0 %v1036_v10 }
  0x69   :  { %962 = vmatprep.subr.bf16.mxu0 %v1066_v61 }
  0x6c   :  { %963 = vmatpush3.bf16.msra.mxu0 %v1037_v36 }
  0x6d   :  { %964 = vmatprep.subr.bf16.mxu0 %v1066_v61 }
  0x70   :  { %965 = vmatpush3.bf16.msra.mxu0 %v1038_v37 }
 0x106   :  { %v862_v15 = vpop.f32.mrb[0].mxu0 }
 0x107   :  { %v863_v17 = vpop.f32.mrb[1].mxu0 }
 0x108   :  { %v864_v18 = vadd.f32 %v863_v17, %v862_v15  ;;  %v865_v19 = vpop.f32.mrb[2].mxu0  ;;  %v884_v20 = vpop.f32.mrb[0].mxu1 }
 0x109   :  { %v866_v21 = vpop.f32.mrb[3].mxu0  ;;  %v885_v23 = vpop.f32.mrb[1].mxu1 }
 0x10a   :  { %v471_v22 = vadd.f32 %v864_v18, %v147_v16  ;;  %v886_v24 = vadd.f32 %v885_v23, %v884_v20  ;;  %v887_v25 = vpop.f32.mrb[2].mxu1 }
 0x10b   :  { %v888_v26 = vpop.f32.mrb[3].mxu1 }
 0x10c   :  { %v511_v27 = vadd.f32 %v886_v24, %v471_v22 }
 0x126   :  { %v906_v28 = vpop.f32.mrb[4].mxu0 }
 0x127   :  { %v907_v29 = vpop.f32.mrb[5].mxu0 }
 0x128   :  { %v908_v30 = vadd.f32 %v907_v29, %v906_v28  ;;  %v909_v31 = vpop.f32.mrb[6].mxu0 }
 0x129   :  { %v910_v32 = vpop.f32.mrb[7].mxu0 }
 0x12a   :  { %v551_v33 = vadd.f32 %v908_v30, %v511_v27 }
 0x12c   :  { %v556_v34 = vmax.f32 %v551_v33, 0.0 }
 0x12e   :  { %v557_v35 = vpack.c.bf16 %v556_v34, %v556_v34 }
 0x130   :  { %947 = vmatmul.mubr.bf16.vlgmr.msra.gmra.mrb[4].mxu1 %v557_v35 }
 0x203   :  { %v660_v40 = vpop.f32.mrb[4].mxu1 }
 0x204   :  { %v661_v41 = vadd.f32 %v660_v40, %v577_v39  ;;  %v948_v42 = vpop.f32.mrb[5].mxu1 }
 0x205   :  { %v663_v43 = vpop.f32.mrb[6].mxu1 }
 0x206   :  { %v666_v44 = vmax.f32 %v661_v41, 0.0  ;;  %v949_v45 = vpop.f32.mrb[7].mxu1 }
 0x208   :  { %v667_v46 = vpack.c.bf16 %v666_v44, %v666_v44 }
 0x20a   :  { %967 = vmatmul.mubr.bf16.vlgmr.msra.gmra.mrb[8].mxu0 %v667_v46 }
 0x2dd   :  { %v770_v49 = vpop.f32.mrb[8].mxu0 }
 0x2de   :  { %v771_v50 = vadd.f32 %v770_v49, %v687_v48  ;;  %v968_v51 = vpop.f32.mrb[9].mxu0 }
 0x2df   :  { %v773_v52 = vpop.f32.mrb[10].mxu0 }
 0x2e0   :  { %776 = vst [vmem:[%s1205_s5] sm:$0xff] %v771_v50  ;;  %v969_v53 = vpop.f32.mrb[11].mxu0 }
 0x2e1   :  { %781 = vsyncpa [#allocation3], 1 }

</bundles_post_ra>
